<compile_context>
chip_gen: v7x
topology: tpu7x:2x2x1
jax: 0.10.0
libtpu: 0.0.40
codegen_flags: <defaults>
</compile_context>

<pallas_src>
import functools
import math

import jax
import jax.numpy as jnp
from jax import lax
from jax.experimental import pallas as pl
from jax.experimental.pallas import tpu as pltpu


def _attn_kernel(d0_ref, d1_ref, mask_ref, o_ref, *, scale, mxu_dtype, q_block):
    # Block shapes:
    #   d0/d1 : (Bt, S, D)  full sequence (K/V side), revisited across q steps
    #   mask  : (1, Tq, S)  broadcast over the batch block
    #   o     : (Bt, Tq, D)
    f32 = jnp.float32
    q_start = pl.multiple_of(pl.program_id(1) * q_block, q_block)

    # K/V side: full sequence (VPU add, then cast once for the MXU).
    d = d0_ref[...] + d1_ref[...]                        # (Bt, S, D)
    d_mxu = d.astype(mxu_dtype)

    # Q side: only this query tile; fold 1/sqrt(D) into the MXU operand
    # (S*D multiplies instead of S*S).
    q = (d0_ref[:, pl.ds(q_start, q_block), :]
         + d1_ref[:, pl.ds(q_start, q_block), :])
    q = (q * scale).astype(mxu_dtype)                    # (Bt, Tq, D)

    # scores = (q*scale) @ d^T as a batched dot_general contracting the last
    # dims -> no explicit XLU transpose; f32 accumulation on the MXU.
    s = lax.dot_general(q, d_mxu, (((2,), (2,)), ((0,), (0,))),
                        preferred_element_type=f32)       # (Bt, Tq, S)
    s = s + mask_ref[...].astype(f32)                     # additive mask

    # Numerically stable softmax; exp runs in the MXU dtype (bf16 on the
    # throughput path) while the row-sum stays f32.
    m = jnp.max(s, axis=-1, keepdims=True)
    p = jnp.exp((s - m).astype(mxu_dtype))                # (Bt, Tq, S)
    denom = jnp.sum(p.astype(f32), axis=-1, keepdims=True)

    # PV matmul first, normalize after (Bt*Tq*D multiplies, no (S,S) cast).
    pv = lax.dot_general(p, d_mxu, (((2,), (1,)), ((0,), (0,))),
                         preferred_element_type=f32)      # (Bt, Tq, D)
    use_approx = jnp.dtype(mxu_dtype) != jnp.dtype(jnp.float32)
    out = pv * pl.reciprocal(denom, approx=use_approx)
    o_ref[...] = out.astype(o_ref.dtype)


def _device_kind():
    try:
        return jax.devices()[0].device_kind.lower()
    except Exception:  # no accelerator / interpret-only environment
        return ""


def sdp_attention(d0, d1, mask, *, mxu_dtype=None, q_block=None,
                  batch_grid_steps=None):
    """Pallas TPU implementation of:
         d = d0 + d1
         softmax(d @ d^T / sqrt(D) + mask, -1) @ d

    mxu_dtype:  dtype of the MXU operands (accumulation is always f32).
                Defaults to bf16 for f32 inputs (bf16-native MXU); pass
                jnp.float32 for a full-precision path.
    q_block:    query-tile size (None -> auto; full S for S <= 512).
    batch_grid_steps: grid steps along batch (None -> 2 on v7x, else 1).
    """
    B, S, D = d0.shape
    assert d1.shape == (B, S, D)
    if mask.ndim == 2:
        mask = mask[None]
    # Mask must broadcast over batch (the module's (1, S, S) convention).
    assert mask.shape == (1, S, S), mask.shape

    scale = 1.0 / math.sqrt(D)
    if mxu_dtype is None:
        mxu_dtype = jnp.bfloat16 if d0.dtype == jnp.float32 else d0.dtype

    kind = _device_kind()
    is_v7x = "v7" in kind

    # Batch split only pays on 2-TensorCore parts (v7x); on 1-TC chips an
    # extra grid step is pure per-step overhead.
    if batch_grid_steps is None:
        batch_grid_steps = 2 if is_v7x else 1
    if batch_grid_steps > 1 and B >= batch_grid_steps and B % batch_grid_steps == 0:
        grid_b = batch_grid_steps
    else:
        grid_b = 1
    Bt = B // grid_b

    # Query tiling keeps score/prob temporaries at O(Bt*Tq*S).
    if q_block is None:
        q_block = S
        if S > 512:
            for t in (512, 256, 128, 64, 32, 16, 8):
                if S % t == 0:
                    q_block = t
                    break
    assert S % q_block == 0 and (q_block == S or q_block % 8 == 0)
    n_q = S // q_block

    # VMEM estimate: double-buffered I/O tiles plus the intermediates the
    # kernel actually materializes (d, d_mxu, q, scores, p, pv/out).
    f32_b = 4
    in_b = jnp.dtype(d0.dtype).itemsize
    mxu_b = jnp.dtype(mxu_dtype).itemsize
    mask_b = jnp.dtype(mask.dtype).itemsize
    io_tiles = 2 * (2 * Bt * S * D * in_b
                    + q_block * S * mask_b
                    + Bt * q_block * D * in_b)
    interm = (Bt * S * D * (f32_b + mxu_b)            # d, d_mxu
              + Bt * q_block * D * mxu_b              # q (scaled)
              + Bt * q_block * S * (f32_b + mxu_b)    # scores, p
              + Bt * q_block * D * 2 * f32_b)         # pv, f32 out
    vmem_est = io_tiles + interm

    vmem_limit = None
    if vmem_est > 16 * 1024 * 1024:  # v5e default scoped limit
        cap = (48 if is_v7x else 100) * 1024 * 1024
        vmem_limit = min(cap, max(int(vmem_est * 1.5), 32 * 1024 * 1024))
        # TODO(synk): for very large S (limit hits the cap) switch to a
        # KV-tiled online-softmax (flash) kernel instead of full (Tq, S) scores.

    kernel = functools.partial(_attn_kernel, scale=scale, mxu_dtype=mxu_dtype,
                               q_block=q_block)

    # TODO(synk): D=32 makes output stores masked (25% lane utilization) and
    # leaves the MXU tiles mostly empty; for multi-head use, pack heads
    # wrapper-side so the last dim reaches 128 (lane-dense stores, full MXU).
    # TODO(synk): the mask block index is constant across grid steps; a
    # single-buffered mask (pipeline_mode=pl.Buffered(1)) would save one
    # (Tq, S) VMEM buffer at large S.
    return pl.pallas_call(
        kernel,
        out_shape=jax.ShapeDtypeStruct((B, S, D), d0.dtype),
        grid_spec=pltpu.PrefetchScalarGridSpec(
            num_scalar_prefetch=0,
            grid=(grid_b, n_q),
            in_specs=[
                pl.BlockSpec((Bt, S, D), lambda b, q: (b, 0, 0)),
                pl.BlockSpec((Bt, S, D), lambda b, q: (b, 0, 0)),
                # Mask block index is constant in b -> no re-DMA across batch.
                pl.BlockSpec((1, q_block, S), lambda b, q: (0, q, 0)),
            ],
            out_specs=pl.BlockSpec((Bt, q_block, D), lambda b, q: (b, q, 0)),
        ),
        compiler_params=pltpu.CompilerParams(
            dimension_semantics=("parallel", "parallel"),
            vmem_limit_bytes=vmem_limit,
        ),
    )(d0, d1, mask)


def _reference(d0, d1, mask):
    # precision=HIGHEST: on TPU the default f32 matmul precision is bf16,
    # which would make the *reference* the inaccurate side of the comparison.
    hp = jax.lax.Precision.HIGHEST
    d = d0 + d1
    scores = (jnp.einsum("bsd,btd->bst", d, d, precision=hp)
              / math.sqrt(d0.shape[-1]) + mask)
    attn = jax.nn.softmax(scores, axis=-1)
    return jnp.einsum("bst,btd->bsd", attn, d, precision=hp)


if __name__ == "__main__":
    key = jax.random.PRNGKey(0)
    k0, k1, k2 = jax.random.split(key, 3)

    B, S, D = 2, 64, 32
    d0 = jax.random.normal(k0, (B, S, D), dtype=jnp.float32)
    d1 = jax.random.normal(k1, (B, S, D), dtype=jnp.float32)
    # Mirror the PyTorch script's mask semantics: an additive mask broadcast
    # over batch (a mixed 0 / -1e9 mask keeps the softmax non-degenerate).
    mask = jnp.where(
        jax.random.uniform(k2, (1, S, S)) > 0.7, -1e9, 0.0
    ).astype(jnp.float32)

    ref = _reference(d0, d1, mask)

    # Full-f32 MXU path: tight correctness check (exact reciprocal, f32 exp).
    out_f32 = sdp_attention(d0, d1, mask, mxu_dtype=jnp.float32)
    jax.block_until_ready(out_f32)
    assert out_f32.shape == (B, S, D)
    err32 = float(jnp.max(jnp.abs(out_f32 - ref)))
    assert jnp.allclose(out_f32, ref, atol=2e-2, rtol=2e-2), f"f32 path err {err32}"

    # Default throughput path (bf16 MXU operands, bf16 exp, f32 accumulation).
    out = sdp_attention(d0, d1, mask)
    jax.block_until_ready(out)
    assert out.shape == (B, S, D)
    errbf = float(jnp.max(jnp.abs(out - ref)))
    assert jnp.allclose(out, ref, atol=2e-1, rtol=2e-1), f"bf16 path err {errbf}"

    print("KERNEL_OK")
</pallas_src>

<mosaic_0001>
module attributes {stable_mosaic.version = 11 : i64} {
  func.func @_attn_kernel(%arg0: i32, %arg1: i32, %arg2: memref<2x64x32xf32, #tpu.memory_space<vmem>>, %arg3: memref<2x64x32xf32, #tpu.memory_space<vmem>>, %arg4: memref<1x64x64xf32, #tpu.memory_space<vmem>>, %arg5: memref<2x64x32xf32, #tpu.memory_space<vmem>>) attributes {dimension_semantics = [#tpu.dimension_semantics<parallel>, #tpu.dimension_semantics<parallel>], iteration_bounds = array<i64: 1, 1>, scalar_prefetch = 0 : i64, scratch_operands = 0 : i64, tpu.core_type = #tpu.core_type<tc>, window_params = [{transform_indices = @transform_0, window_bounds = array<i64: 2, 64, 32>}, {transform_indices = @transform_1, window_bounds = array<i64: 2, 64, 32>}, {transform_indices = @transform_2, window_bounds = array<i64: 1, 64, 64>}, {transform_indices = @transform_3, window_bounds = array<i64: 2, 64, 32>}]} {
    %c64_i32 = arith.constant 64 : i32
    %0 = arith.muli %arg1, %c64_i32 : i32
    %1 = tpu.assume_multiple %0, 64 : i32
    %c0 = arith.constant 0 : index
    %c0_0 = arith.constant 0 : index
    %c0_1 = arith.constant 0 : index
    %2 = vector.load %arg2[%c0, %c0_0, %c0_1] : memref<2x64x32xf32, #tpu.memory_space<vmem>>, vector<2x64x32xf32>
    %c0_2 = arith.constant 0 : index
    %c0_3 = arith.constant 0 : index
    %c0_4 = arith.constant 0 : index
    %3 = vector.load %arg3[%c0_2, %c0_3, %c0_4] : memref<2x64x32xf32, #tpu.memory_space<vmem>>, vector<2x64x32xf32>
    %4 = arith.addf %2, %3 : vector<2x64x32xf32>
    %c0_5 = arith.constant 0 : index
    %5 = arith.index_cast %1 : i32 to index
    %c0_6 = arith.constant 0 : index
    %6 = vector.load %arg2[%c0_5, %5, %c0_6] : memref<2x64x32xf32, #tpu.memory_space<vmem>>, vector<2x64x32xf32>
    %c0_7 = arith.constant 0 : index
    %7 = arith.index_cast %1 : i32 to index
    %c0_8 = arith.constant 0 : index
    %8 = vector.load %arg3[%c0_7, %7, %c0_8] : memref<2x64x32xf32, #tpu.memory_space<vmem>>, vector<2x64x32xf32>
    %9 = arith.addf %6, %8 : vector<2x64x32xf32>
    %cst = arith.constant 0.176776692 : f32
    %10 = vector.broadcast %cst : f32 to vector<2x64x32xf32>
    %11 = arith.mulf %9, %10 : vector<2x64x32xf32>
    %cst_9 = arith.constant dense<0.000000e+00> : vector<2x64x64xf32>
    %12 = tpu.matmul %11, %4, %cst_9 {dimension_numbers = #tpu.dot_dimension_numbers<[2], [2], [1], [1], [0, 0, 0, 1, 1, 1], [0], [0]>} : vector<2x64x32xf32>, vector<2x64x32xf32>, vector<2x64x64xf32> -> vector<2x64x64xf32>
    %c0_10 = arith.constant 0 : index
    %c0_11 = arith.constant 0 : index
    %c0_12 = arith.constant 0 : index
    %13 = vector.load %arg4[%c0_10, %c0_11, %c0_12] : memref<1x64x64xf32, #tpu.memory_space<vmem>>, vector<1x64x64xf32>
    %14 = vector.broadcast %13 : vector<1x64x64xf32> to vector<2x64x64xf32>
    %15 = arith.addf %12, %14 : vector<2x64x64xf32>
    %cst_13 = arith.constant dense<0xFF800000> : vector<2x64xf32>
    %16 = vector.multi_reduction <maximumf>, %15, %cst_13 [2] : vector<2x64x64xf32> to vector<2x64xf32>
    %17 = vector.shape_cast %16 : vector<2x64xf32> to vector<2x64x1xf32>
    %18 = vector.broadcast %17 : vector<2x64x1xf32> to vector<2x64x64xf32>
    %19 = arith.subf %15, %18 : vector<2x64x64xf32>
    %20 = math.exp %19 : vector<2x64x64xf32>
    %cst_14 = arith.constant dense<0.000000e+00> : vector<2x64xf32>
    %21 = vector.multi_reduction <add>, %20, %cst_14 [2] : vector<2x64x64xf32> to vector<2x64xf32>
    %22 = vector.shape_cast %21 : vector<2x64xf32> to vector<2x64x1xf32>
    %cst_15 = arith.constant dense<0.000000e+00> : vector<2x64x32xf32>
    %23 = tpu.matmul %20, %4, %cst_15 {dimension_numbers = #tpu.dot_dimension_numbers<[2], [1], [1], [2], [0, 0, 0, 1, 1, 2], [0], [0]>} : vector<2x64x64xf32>, vector<2x64x32xf32>, vector<2x64x32xf32> -> vector<2x64x32xf32>
    %24 = tpu.reciprocal %22 : vector<2x64x1xf32> -> vector<2x64x1xf32>
    %25 = vector.broadcast %24 : vector<2x64x1xf32> to vector<2x64x32xf32>
    %26 = arith.mulf %23, %25 : vector<2x64x32xf32>
    %c0_16 = arith.constant 0 : index
    %c0_17 = arith.constant 0 : index
    %c0_18 = arith.constant 0 : index
    %27 = vector.load %arg5[%c0_16, %c0_17, %c0_18] : memref<2x64x32xf32, #tpu.memory_space<vmem>>, vector<2x64x32xf32>
    tpu.vector_store %arg5[%c0_16, %c0_17, %c0_18], %26 {strides = array<i32>} : memref<2x64x32xf32, #tpu.memory_space<vmem>>, vector<2x64x32xf32>,
    return
  }
  func.func @transform_0(%arg0: i32, %arg1: i32) -> (i32, i32, i32) {
    %c0_i32 = arith.constant 0 : i32
    %c0_i32_0 = arith.constant 0 : i32
    %c0_i32_1 = arith.constant 0 : i32
    return %arg0, %c0_i32, %c0_i32_0 : i32, i32, i32
  }
  func.func @transform_1(%arg0: i32, %arg1: i32) -> (i32, i32, i32) {
    %c0_i32 = arith.constant 0 : i32
    %c0_i32_0 = arith.constant 0 : i32
    %c0_i32_1 = arith.constant 0 : i32
    return %arg0, %c0_i32, %c0_i32_0 : i32, i32, i32
  }
  func.func @transform_2(%arg0: i32, %arg1: i32) -> (i32, i32, i32) {
    %c0_i32 = arith.constant 0 : i32
    %c0_i32_0 = arith.constant 0 : i32
    %c0_i32_1 = arith.constant 0 : i32
    return %c0_i32, %arg1, %c0_i32_0 : i32, i32, i32
  }
  func.func @transform_3(%arg0: i32, %arg1: i32) -> (i32, i32, i32) {
    %c0_i32 = arith.constant 0 : i32
    %c0_i32_0 = arith.constant 0 : i32
    return %arg0, %arg1, %c0_i32 : i32, i32, i32
  }
}

</mosaic_0001>

<bundles_post_ra>
// kernel: tpu_custom_call.1
= control target key start
LH: loop header
LB: loop body
LE: loop exit
PB: predicated region body
PF: predicated region fallthrough
CT: control target
= control target key end

     0   :  { %vm137_vm0 = vcmask 261120   ;;  %vm444_vm2 = vcmask 523264   ;;  %s1663_s0 = inlined_call_operand.vmem [shape: f32[2,64,32], index: 0, kind: input, shape index: {}]   ;;  %s1664_s1 = inlined_call_operand.vmem [shape: f32[2,64,32], index: 1, kind: input, shape index: {}]   ;;  %s1665_s2 = inlined_call_operand.vmem [shape: f32[1,64,64], index: 2, kind: input, shape index: {}]   ;;  %s1666_s3 = inlined_call_operand.vmem [shape: f32[2,64,32], index: 3, kind: output, shape index: {}]  }
   0x1   :  { %v15_v0 = vld [vmem:[%s1663_s0] sm:$0xff]  ;;  %v16_v1 = vld [vmem:[%s1663_s0 + $0x8] sm:$0xff]  ;;  %vm1301_vm1 = vmpackc.low %vm137_vm0, %vm137_vm0 }
   0x2   :  { %v31_v2 = vld [vmem:[%s1664_s1] sm:$0xff]  ;;  %v32_v3 = vld [vmem:[%s1664_s1 + $0x8] sm:$0xff]  ;;  %v17_v13 = vld [vmem:[%s1663_s0 + $0x10] sm:$0xff] }
   0x3   :  { %v47_v4 = vadd.f32 %v31_v2, %v15_v0  ;;  %v23_v6 = vld [vmem:[%s1663_s0 + $0x40] sm:$0xff]  ;;  %v1308_v7 = vadd.f32 %v32_v3, %v16_v1  ;;  %v24_v8 = vld [vmem:[%s1663_s0 + $0x48] sm:$0xff]  ;;  %v18_v14 = vld [vmem:[%s1663_s0 + $0x18] sm:$0xff] }
   0x4   :  { %v39_v9 = vld [vmem:[%s1664_s1 + $0x40] sm:$0xff]  ;;  %v40_v10 = vld [vmem:[%s1664_s1 + $0x48] sm:$0xff]  ;;  %v33_v15 = vld [vmem:[%s1664_s1 + $0x10] sm:$0xff] }
   0x5   :  { %v55_v11 = vadd.f32 %v39_v9, %v23_v6  ;;  %v1319_v12 = vadd.f32 %v40_v10, %v24_v8  ;;  %v113_v16 = vmul.f32 0.17677669, %v47_v4  ;;  %v1331_v17 = vpack.c.bf16 %v1308_v7, %v47_v4  ;;  %v34_v18 = vld [vmem:[%s1664_s1 + $0x18] sm:$0xff]  ;;  %v25_v20 = vld [vmem:[%s1663_s0 + $0x50] sm:$0xff]  ;;  %v19_v26 = vld [vmem:[%s1663_s0 + $0x20] sm:$0xff] }
   0x6   :  { %v49_v19 = vadd.f32 %v33_v15, %v17_v13  ;;  %v26_v21 = vld [vmem:[%s1663_s0 + $0x58] sm:$0xff]  ;;  %v50_v23 = vadd.f32 %v34_v18, %v18_v14  ;;  %v41_v24 = vld [vmem:[%s1664_s1 + $0x50] sm:$0xff]  ;;  %v20_v30 = vld [vmem:[%s1663_s0 + $0x28] sm:$0xff]  ;;  %v114_v59 = vmul.f32 0.17677669, %v1308_v7 }
   0x7   :  { %v1343_v22 = vpack.c.bf16 %v1319_v12, %v55_v11  ;;  %v42_v25 = vld [vmem:[%s1664_s1 + $0x58] sm:$0xff]  ;;  %1027 = vmatprep.mubr.msk.f32.mxu0 %vm137_vm0, %v113_v16  ;;  %v121_v27 = vmul.f32 0.17677669, %v55_v11  ;;  %1125 = vmatprep.subr.msk.bf16.mxu0 %vm1301_vm1, %v1331_v17  ;;  %v57_v28 = vadd.f32 %v41_v24, %v25_v20  ;;  %v35_v31 = vld [vmem:[%s1664_s1 + $0x20] sm:$0xff]  ;;  %v36_v32 = vld [vmem:[%s1664_s1 + $0x28] sm:$0xff] }
   0x8   :  { %v58_v29 = vadd.f32 %v42_v25, %v26_v21  ;;  %1128 = vmatpush3.bf16.xpose.msk.msra.mxu0 %vm1301_vm1, %v1331_v17  ;;  %v1373_v33 = vpack.c.bf16 %v50_v23, %v49_v19  ;;  %v27_v34 = vld [vmem:[%s1663_s0 + $0x60] sm:$0xff]  ;;  %v28_v35 = vld [vmem:[%s1663_s0 + $0x68] sm:$0xff]  ;;  %v51_v38 = vadd.f32 %v35_v31, %v19_v26  ;;  %v52_v39 = vadd.f32 %v36_v32, %v20_v30  ;;  %v21_v44 = vld [vmem:[%s1663_s0 + $0x30] sm:$0xff] }
   0x9   :  { %1149 = vmatprep.subr.msk.bf16.mxu1 %vm1301_vm1, %v1343_v22  ;;  %v43_v36 = vld [vmem:[%s1664_s1 + $0x60] sm:$0xff]  ;;  %v44_v40 = vld [vmem:[%s1664_s1 + $0x68] sm:$0xff]  ;;  %1055 = vmatprep.mubr.msk.f32.mxu1 %vm137_vm0, %v121_v27  ;;  %v22_v45 = vld [vmem:[%s1663_s0 + $0x38] sm:$0xff]  ;;  %v122_v60 = vmul.f32 0.17677669, %v1319_v12 }
   0xa   :  { %1152 = vmatpush3.bf16.xpose.msk.msra.mxu1 %vm1301_vm1, %v1343_v22  ;;  %v1153_v37 = vpack.c.bf16 %v58_v29, %v57_v28  ;;  %1131 = vmatprep.subr.msk.bf16.mxu0 %vm1301_vm1, %v1373_v33  ;;  %v59_v41 = vadd.f32 %v43_v36, %v27_v34  ;;  %v60_v42 = vadd.f32 %v44_v40, %v28_v35  ;;  %v37_v47 = vld [vmem:[%s1664_s1 + $0x30] sm:$0xff]  ;;  %v38_v48 = vld [vmem:[%s1664_s1 + $0x38] sm:$0xff]  ;;  %v115_v61 = vmul.f32 0.17677669, %v49_v19  ;;  %v130_v9 = vld [vmem:[%s1665_s2 + $0x8] sm:$0xff] }
   0xb   :  { %v1135_v43 = vpack.c.bf16 %v52_v39, %v51_v38  ;;  %v29_v49 = vld [vmem:[%s1663_s0 + $0x70] sm:$0xff]  ;;  %v30_v50 = vld [vmem:[%s1663_s0 + $0x78] sm:$0xff]  ;;  %v53_v53 = vadd.f32 %v37_v47, %v21_v44  ;;  %v54_v54 = vadd.f32 %v38_v48, %v22_v45  ;;  %v123_v62 = vmul.f32 0.17677669, %v57_v28  ;;  %v129_v10 = vld [vmem:[%s1665_s2] sm:$0xff] }
   0xc   :  { %1155 = vmatprep.subr.msk.bf16.mxu1 %vm1301_vm1, %v1153_v37  ;;  %v1159_v46 = vpack.c.bf16 %v60_v42, %v59_v41  ;;  %v45_v51 = vld [vmem:[%s1664_s1 + $0x70] sm:$0xff]  ;;  %v46_v52 = vld [vmem:[%s1664_s1 + $0x78] sm:$0xff]  ;;  %v116_v63 = vmul.f32 0.17677669, %v50_v23  ;;  %v124_v0 = vmul.f32 0.17677669, %v58_v29 }
   0xd   :  { %v61_v55 = vadd.f32 %v45_v51, %v29_v49  ;;  %v62_v56 = vadd.f32 %v46_v52, %v30_v50  ;;  %v1141_v57 = vpack.c.bf16 %v54_v54, %v53_v53  ;;  %v117_v1 = vmul.f32 0.17677669, %v51_v38  ;;  %v132_v20 = vld [vmem:[%s1665_s2 + $0x18] sm:$0xff]  ;;  %v131_v30 = vld [vmem:[%s1665_s2 + $0x10] sm:$0xff]  ;;  %v134_v36 = vld [vmem:[%s1665_s2 + $0x28] sm:$0xff] }
   0xe   :  { %v125_v2 = vmul.f32 0.17677669, %v59_v41  ;;  %v118_v3 = vmul.f32 0.17677669, %v52_v39  ;;  %v126_v4 = vmul.f32 0.17677669, %v60_v42 }
   0xf   :  { %v1165_v58 = vpack.c.bf16 %v62_v56, %v61_v55  ;;  %v119_v5 = vmul.f32 0.17677669, %v53_v53  ;;  %v127_v6 = vmul.f32 0.17677669, %v61_v55  ;;  %v120_v7 = vmul.f32 0.17677669, %v54_v54 }
  0x10   :  { %1134 = vmatpush3.bf16.xpose.msk.msra.mxu0 %vm1301_vm1, %v1373_v33  ;;  %v128_v8 = vmul.f32 0.17677669, %v62_v56  ;;  %v133_v47 = vld [vmem:[%s1665_s2 + $0x20] sm:$0xff]  ;;  %v135_v51 = vld [vmem:[%s1665_s2 + $0x30] sm:$0xff] }
  0x11   :  { %1137 = vmatprep.subr.msk.bf16.mxu0 %vm1301_vm1, %v1135_v43 }
  0x12   :  { %1158 = vmatpush3.bf16.xpose.msk.msra.mxu1 %vm1301_vm1, %v1153_v37 }
  0x13   :  { %1161 = vmatprep.subr.msk.bf16.mxu1 %vm1301_vm1, %v1159_v46 }
  0x18   :  { %1140 = vmatpush3.bf16.xpose.msk.msra.mxu0 %vm1301_vm1, %v1135_v43 }
  0x19   :  { %1143 = vmatprep.subr.msk.bf16.mxu0 %vm1301_vm1, %v1141_v57 }
  0x1a   :  { %1164 = vmatpush3.bf16.xpose.msk.msra.mxu1 %vm1301_vm1, %v1159_v46 }
  0x1b   :  { %1167 = vmatprep.subr.msk.bf16.mxu1 %vm1301_vm1, %v1165_v58 }
  0x20   :  { %1146 = vmatpush3.bf16.xpose.msk.msra.mxu0 %vm1301_vm1, %v1141_v57 }
  0x21   :  { %1172 = vmatprep.subr.bf16.mxu0 %v1331_v17 }
  0x22   :  { %1170 = vmatpush3.bf16.xpose.msk.msra.mxu1 %vm1301_vm1, %v1165_v58 }
  0x23   :  { %1188 = vmatprep.subr.bf16.mxu1 %v1343_v22 }
  0x27   :  { %1028 = vmatmul.mubr.msk.f32.vlgmr.msra.gmra.mrb[0].mxu0 %vm137_vm0, %v114_v59 }
  0x28   :  { %1030 = vmatprep.mubr.msk.f32.mxu0 %vm137_vm0, %v115_v61  ;;  %1174 = vmatpush3.bf16.msra.mxu0 %v1331_v17 }
  0x29   :  { %1056 = vmatmul.mubr.msk.f32.vlgmr.msra.gmra.mrb[0].mxu1 %vm137_vm0, %v122_v60  ;;  %1176 = vmatprep.subr.bf16.mxu0 %v1373_v33 }
  0x2a   :  { %1058 = vmatprep.mubr.msk.f32.mxu1 %vm137_vm0, %v123_v62  ;;  %1190 = vmatpush3.bf16.msra.mxu1 %v1343_v22 }
  0x2b   :  { %1031 = vmatmul.mubr.msk.f32.gmra.mrb[2].mxu0 %vm137_vm0, %v116_v63  ;;  %1192 = vmatprep.subr.bf16.mxu1 %v1153_v37 }
  0x2c   :  { %1033 = vmatprep.mubr.msk.f32.mxu0 %vm137_vm0, %v117_v1  ;;  %1178 = vmatpush3.bf16.msra.mxu0 %v1373_v33 }
  0x2d   :  { %1059 = vmatmul.mubr.msk.f32.gmra.mrb[2].mxu1 %vm137_vm0, %v124_v0  ;;  %1180 = vmatprep.subr.bf16.mxu0 %v1135_v43 }
  0x2e   :  { %1061 = vmatprep.mubr.msk.f32.mxu1 %vm137_vm0, %v125_v2  ;;  %1194 = vmatpush3.bf16.msra.mxu1 %v1153_v37 }
  0x2f   :  { %1034 = vmatmul.mubr.msk.f32.gmra.mrb[4].mxu0 %vm137_vm0, %v118_v3  ;;  %1196 = vmatprep.subr.bf16.mxu1 %v1159_v46 }
  0x30   :  { %1036 = vmatprep.mubr.msk.f32.mxu0 %vm137_vm0, %v119_v5  ;;  %1182 = vmatpush3.bf16.msra.mxu0 %v1135_v43 }
  0x31   :  { %1062 = vmatmul.mubr.msk.f32.gmra.mrb[4].mxu1 %vm137_vm0, %v126_v4  ;;  %1184 = vmatprep.subr.bf16.mxu0 %v1141_v57 }
  0x32   :  { %1064 = vmatprep.mubr.msk.f32.mxu1 %vm137_vm0, %v127_v6  ;;  %1198 = vmatpush3.bf16.msra.mxu1 %v1159_v46 }
  0x33   :  { %1037 = vmatmul.mubr.msk.f32.gmra.mrb[6].mxu0 %vm137_vm0, %v120_v7  ;;  %1200 = vmatprep.subr.bf16.mxu1 %v1165_v58 }
  0x34   :  { %1186 = vmatpush3.bf16.msra.mxu0 %v1141_v57  ;;  %v136_v57 = vld [vmem:[%s1665_s2 + $0x38] sm:$0xff] }
  0x35   :  { %1065 = vmatmul.mubr.msk.f32.gmra.mrb[6].mxu1 %vm137_vm0, %v128_v8 }
  0x36   :  { %1202 = vmatpush3.bf16.msra.mxu1 %v1165_v58 }
  0xfa   :  { %v1029_v11 = vpop.f32.mrb[0].mxu0 }
  0xfb   :  { %v1469_v12 = vadd.f32 %v1029_v11, %v130_v9  ;;  %v252_v13 = vpop.f32.mrb[1].mxu0 }
  0xfc   :  { %v1057_v14 = vpop.f32.mrb[0].mxu1  ;;  %v1471_v15 = vadd.f32 %v252_v13, %v129_v10 }
  0xfd   :  { %v1473_v16 = vadd.f32 %v1057_v14, %v130_v9  ;;  %v405_v17 = vpop.f32.mrb[1].mxu1  ;;  %v448_v19 = vsel %vm444_vm2, %v1469_v12, -inf }
  0xfe   :  { %v1475_v18 = vadd.f32 %v405_v17, %v129_v10  ;;  %449 = vmax.xlane.f32.xlu1 %v448_v19  ;;  %v445_v21 = vsel %vm444_vm2, %v1471_v15, -inf  ;;  %v1032_v22 = vpop.f32.mrb[2].mxu0 }
  0xff   :  { %446 = vmax.xlane.f32.xlu0 %v445_v21  ;;  %v472_v24 = vsel %vm444_vm2, %v1473_v16, -inf  ;;  %v262_v25 = vpop.f32.mrb[3].mxu0  ;;  %v1488_v27 = vadd.f32 %v1032_v22, %v132_v20 }
 0x100   :  { %v1060_v23 = vpop.f32.mrb[2].mxu1  ;;  %v469_v29 = vsel %vm444_vm2, %v1475_v18, -inf  ;;  %v1504_v39 = vadd.f32 %v262_v25, %v131_v30 }
 0x101   :  { %v1486_v26 = vadd.f32 %v1060_v23, %v132_v20  ;;  %v415_v28 = vpop.f32.mrb[3].mxu1  ;;  %v454_v35 = vsel %vm444_vm2, %v1488_v27, -inf }
 0x102   :  { %473 = vmax.xlane.f32.xlu1 %v472_v24  ;;  %v1035_v31 = vpop.f32.mrb[4].mxu0  ;;  %v1502_v38 = vadd.f32 %v415_v28, %v131_v30  ;;  %v451_v48 = vsel %vm444_vm2, %v1504_v39, -inf }
 0x103   :  { %470 = vmax.xlane.f32.xlu0 %v469_v29  ;;  %v478_v32 = vsel %vm444_vm2, %v1486_v26, -inf  ;;  %v272_v34 = vpop.f32.mrb[5].mxu0  ;;  %v1508_v44 = vadd.f32 %v1035_v31, %v134_v36 }
 0x104   :  { %v1063_v33 = vpop.f32.mrb[4].mxu1  ;;  %v475_v46 = vsel %vm444_vm2, %v1502_v38, -inf  ;;  %v1526_v53 = vadd.f32 %v272_v34, %v133_v47 }
 0x105   :  { %v425_v37 = vpop.f32.mrb[5].mxu1  ;;  %v1506_v41 = vadd.f32 %v1063_v33, %v134_v36  ;;  %v460_v50 = vsel %vm444_vm2, %v1508_v44, -inf }
 0x106   :  { %479 = vmax.xlane.f32.xlu1 %v478_v32  ;;  %v1038_v40 = vpop.f32.mrb[6].mxu0  ;;  %v1524_v52 = vadd.f32 %v425_v37, %v133_v47  ;;  %v457_v58 = vsel %vm444_vm2, %v1526_v53, -inf }
 0x107   :  { %455 = vmax.xlane.f32.xlu0 %v454_v35  ;;  %v282_v43 = vpop.f32.mrb[7].mxu0  ;;  %v484_v49 = vsel %vm444_vm2, %v1506_v41, -inf  ;;  %v1545_v62 = vadd.f32 %v1038_v40, %v136_v57 }
 0x108   :  { %v1066_v42 = vpop.f32.mrb[6].mxu1  ;;  %v1530_v55 = vadd.f32 %v282_v43, %v135_v51  ;;  %v481_v56 = vsel %vm444_vm2, %v1524_v52, -inf }
 0x109   :  { %v435_v45 = vpop.f32.mrb[7].mxu1  ;;  %v1543_v61 = vadd.f32 %v1066_v42, %v136_v57  ;;  %v466_v0 = vsel %vm444_vm2, %v1545_v62, -inf }
 0x10a   :  { %476 = vmax.xlane.f32.xlu1 %v475_v46  ;;  %v1528_v54 = vadd.f32 %v435_v45, %v135_v51  ;;  %v463_v60 = vsel %vm444_vm2, %v1530_v55, -inf }
 0x10b   :  { %452 = vmax.xlane.f32.xlu0 %v451_v48  ;;  %v490_v63 = vsel %vm444_vm2, %v1543_v61, -inf }
 0x10c   :  { %v487_v59 = vsel %vm444_vm2, %v1528_v54, -inf }
 0x10e   :  { %485 = vmax.xlane.f32.xlu1 %v484_v49 }
 0x10f   :  { %461 = vmax.xlane.f32.xlu0 %v460_v50 }
 0x112   :  { %482 = vmax.xlane.f32.xlu1 %v481_v56 }
 0x113   :  { %458 = vmax.xlane.f32.xlu0 %v457_v58 }
 0x116   :  { %488 = vmax.xlane.f32.xlu1 %v487_v59 }
 0x117   :  { %464 = vmax.xlane.f32.xlu0 %v463_v60 }
 0x11a   :  { %491 = vmax.xlane.f32.xlu1 %v490_v63 }
 0x11b   :  { %467 = vmax.xlane.f32.xlu0 %v466_v0 }
 0x18b   :  { %v450_v1 = vpop.xlane.xlu1 %449 }
 0x18c   :  { %v494_v2 = vsub.f32 %v1469_v12, %v450_v1  ;;  %v447_v3 = vpop.xlane.xlu0 %446 }
 0x18d   :  { %v493_v4 = vsub.f32 %v1471_v15, %v447_v3 }
 0x18e   :  { %v511_v5 = vmul.f32 1.442695, %v494_v2 }
 0x18f   :  { %v509_v6 = vmul.f32 1.442695, %v493_v4  ;;  %v474_v7 = vpop.xlane.xlu1 %473 }
 0x190   :  { %1203 = vpow2.f32 %v511_v5  ;;  %v502_v8 = vsub.f32 %v1473_v16, %v474_v7  ;;  %v471_v9 = vpop.xlane.xlu0 %470 }
 0x191   :  { %1205 = vpow2.f32 %v509_v6  ;;  %v501_v10 = vsub.f32 %v1475_v18, %v471_v9 }
 0x192   :  { %v527_v11 = vmul.f32 1.442695, %v502_v8 }
 0x193   :  { %v525_v13 = vmul.f32 1.442695, %v501_v10  ;;  %v480_v14 = vpop.xlane.xlu1 %479 }
 0x194   :  { %1207 = vpow2.f32 %v527_v11  ;;  %v504_v17 = vsub.f32 %v1486_v26, %v480_v14  ;;  %v456_v12 = vpop.xlane.xlu0 %455 }
 0x195   :  { %1209 = vpow2.f32 %v525_v13  ;;  %v496_v15 = vsub.f32 %v1488_v27, %v456_v12 }
 0x196   :  { %v531_v19 = vmul.f32 1.442695, %v504_v17 }
 0x197   :  { %v515_v20 = vmul.f32 1.442695, %v496_v15  ;;  %v477_v21 = vpop.xlane.xlu1 %476 }
 0x198   :  { %v503_v22 = vsub.f32 %v1502_v38, %v477_v21  ;;  %v453_v16 = vpop.xlane.xlu0 %452 }
 0x199   :  { %1211 = vpow2.f32 %v515_v20  ;;  %v495_v23 = vsub.f32 %v1504_v39, %v453_v16 }
 0x19a   :  { %v1204_v18 = vpop.eup %1203  ;;  %v529_v24 = vmul.f32 1.442695, %v503_v22  ;;  %1213 = vpow2.f32 %v531_v19 }
 0x19b   :  { %v1206_v25 = vpop.eup %1205  ;;  %v513_v28 = vmul.f32 1.442695, %v495_v23  ;;  %v486_v29 = vpop.xlane.xlu1 %485  ;;  %v544_v26 = vsel %vm444_vm2, %v1204_v18, 0.0 }
 0x19c   :  { %1215 = vpow2.f32 %v529_v24  ;;  %v506_v27 = vsub.f32 %v1506_v41, %v486_v29  ;;  %545 = vadd.xlane.f32.xlu1 %v544_v26  ;;  %1083 = vmatprep.mubr.msk.f32.mxu0 %vm444_vm2, %v1206_v25  ;;  %v462_v30 = vpop.xlane.xlu0 %461  ;;  %v541_v31 = vsel %vm444_vm2, %v1206_v25, 0.0 }
 0x19d   :  { %1217 = vpow2.f32 %v513_v28  ;;  %v498_v32 = vsub.f32 %v1508_v44, %v462_v30  ;;  %1084 = vmatmul.mubr.msk.f32.vlgmr.msra.gmra.mrb[8].mxu0 %vm444_vm2, %v1204_v18  ;;  %542 = vadd.xlane.f32.xlu0 %v541_v31 }
 0x19e   :  { %v1208_v33 = vpop.eup %1207  ;;  %v535_v35 = vmul.f32 1.442695, %v506_v27 }
 0x19f   :  { %v1210_v34 = vpop.eup %1209  ;;  %v519_v36 = vmul.f32 1.442695, %v498_v32  ;;  %v483_v37 = vpop.xlane.xlu1 %482  ;;  %v568_v38 = vsel %vm444_vm2, %v1208_v33, 0.0 }
 0x1a0   :  { %v505_v39 = vsub.f32 %v1524_v52, %v483_v37  ;;  %569 = vadd.xlane.f32.xlu1 %v568_v38  ;;  %1111 = vmatprep.mubr.msk.f32.mxu1 %vm444_vm2, %v1210_v34  ;;  %v459_v40 = vpop.xlane.xlu0 %458  ;;  %v565_v41 = vsel %vm444_vm2, %v1210_v34, 0.0 }
 0x1a1   :  { %1219 = vpow2.f32 %v519_v36  ;;  %v497_v42 = vsub.f32 %v1526_v53, %v459_v40  ;;  %1112 = vmatmul.mubr.msk.f32.vlgmr.msra.gmra.mrb[8].mxu1 %vm444_vm2, %v1208_v33  ;;  %566 = vadd.xlane.f32.xlu0 %v565_v41 }
 0x1a2   :  { %v533_v43 = vmul.f32 1.442695, %v505_v39  ;;  %1221 = vpow2.f32 %v535_v35 }
 0x1a3   :  { %v1212_v44 = vpop.eup %1211  ;;  %v517_v45 = vmul.f32 1.442695, %v497_v42  ;;  %v489_v46 = vpop.xlane.xlu1 %488 }
 0x1a4   :  { %1223 = vpow2.f32 %v533_v43  ;;  %v507_v47 = vsub.f32 %v1528_v54, %v489_v46  ;;  %v465_v48 = vpop.xlane.xlu0 %464  ;;  %v550_v49 = vsel %vm444_vm2, %v1212_v44, 0.0  ;;  %v1214_v50 = vpop.eup %1213 }
 0x1a5   :  { %1225 = vpow2.f32 %v517_v45  ;;  %v499_v51 = vsub.f32 %v1530_v55, %v465_v48  ;;  %551 = vadd.xlane.f32.xlu1 %v550_v49  ;;  %v574_v60 = vsel %vm444_vm2, %v1214_v50, 0.0 }
 0x1a6   :  { %v1216_v52 = vpop.eup %1215  ;;  %v537_v53 = vmul.f32 1.442695, %v507_v47 }
 0x1a7   :  { %v1218_v56 = vpop.eup %1217  ;;  %v521_v57 = vmul.f32 1.442695, %v499_v51  ;;  %v492_v58 = vpop.xlane.xlu1 %491  ;;  %1114 = vmatprep.mubr.msk.f32.mxu1 %vm444_vm2, %v1216_v52  ;;  %v571_v4 = vsel %vm444_vm2, %v1216_v52, 0.0 }
 0x1a8   :  { %1227 = vpow2.f32 %v537_v53  ;;  %v508_v59 = vsub.f32 %v1543_v61, %v492_v58  ;;  %1086 = vmatprep.mubr.msk.f32.mxu0 %vm444_vm2, %v1218_v56  ;;  %1115 = vmatmul.mubr.msk.f32.gmra.mrb[10].mxu1 %vm444_vm2, %v1214_v50  ;;  %v468_v54 = vpop.xlane.xlu0 %467  ;;  %v547_v55 = vsel %vm444_vm2, %v1218_v56, 0.0 }
 0x1a9   :  { %1229 = vpow2.f32 %v521_v57  ;;  %v500_v63 = vsub.f32 %v1545_v62, %v468_v54  ;;  %575 = vadd.xlane.f32.xlu1 %v574_v60  ;;  %1087 = vmatmul.mubr.msk.f32.gmra.mrb[10].mxu0 %vm444_vm2, %v1212_v44 }
 0x1aa   :  { %v539_v0 = vmul.f32 1.442695, %v508_v59  ;;  %548 = vadd.xlane.f32.xlu0 %v547_v55 }
 0x1ab   :  { %v1220_v1 = vpop.eup %1219  ;;  %v523_v2 = vmul.f32 1.442695, %v500_v63 }
 0x1ac   :  { %1231 = vpow2.f32 %v539_v0  ;;  %v556_v61 = vsel %vm444_vm2, %v1220_v1, 0.0  ;;  %v1222_v3 = vpop.eup %1221 }
 0x1ad   :  { %1233 = vpow2.f32 %v523_v2  ;;  %557 = vadd.xlane.f32.xlu1 %v556_v61  ;;  %v580_v62 = vsel %vm444_vm2, %v1222_v3, 0.0 }
 0x1ae   :  { %v1224_v5 = vpop.eup %1223  ;;  %572 = vadd.xlane.f32.xlu0 %v571_v4 }
 0x1af   :  { %v1226_v6 = vpop.eup %1225  ;;  %1117 = vmatprep.mubr.msk.f32.mxu1 %vm444_vm2, %v1224_v5  ;;  %v577_v10 = vsel %vm444_vm2, %v1224_v5, 0.0 }
 0x1b0   :  { %1089 = vmatprep.mubr.msk.f32.mxu0 %vm444_vm2, %v1226_v6  ;;  %1118 = vmatmul.mubr.msk.f32.gmra.mrb[12].mxu1 %vm444_vm2, %v1222_v3  ;;  %v553_v7 = vsel %vm444_vm2, %v1226_v6, 0.0 }
 0x1b1   :  { %581 = vadd.xlane.f32.xlu1 %v580_v62  ;;  %1090 = vmatmul.mubr.msk.f32.gmra.mrb[12].mxu0 %vm444_vm2, %v1220_v1 }
 0x1b2   :  { %v1228_v8 = vpop.eup %1227  ;;  %554 = vadd.xlane.f32.xlu0 %v553_v7 }
 0x1b3   :  { %v1230_v9 = vpop.eup %1229  ;;  %1120 = vmatprep.mubr.msk.f32.mxu1 %vm444_vm2, %v1228_v8  ;;  %v583_v15 = vsel %vm444_vm2, %v1228_v8, 0.0 }
 0x1b4   :  { %1092 = vmatprep.mubr.msk.f32.mxu0 %vm444_vm2, %v1230_v9  ;;  %v559_v17 = vsel %vm444_vm2, %v1230_v9, 0.0 }
 0x1b6   :  { %v1232_v11 = vpop.eup %1231  ;;  %578 = vadd.xlane.f32.xlu0 %v577_v10 }
 0x1b7   :  { %v1234_v13 = vpop.eup %1233  ;;  %1121 = vmatmul.mubr.msk.f32.gmra.mrb[14].mxu1 %vm444_vm2, %v1232_v11  ;;  %v586_v12 = vsel %vm444_vm2, %v1232_v11, 0.0 }
 0x1b8   :  { %1093 = vmatmul.mubr.msk.f32.gmra.mrb[14].mxu0 %vm444_vm2, %v1234_v13  ;;  %v562_v14 = vsel %vm444_vm2, %v1234_v13, 0.0 }
 0x1b9   :  { %563 = vadd.xlane.f32.xlu1 %v562_v14 }
 0x1ba   :  { %560 = vadd.xlane.f32.xlu0 %v559_v17 }
 0x1bd   :  { %587 = vadd.xlane.f32.xlu1 %v586_v12 }
 0x1be   :  { %584 = vadd.xlane.f32.xlu0 %v583_v15 }
 0x229   :  { %v546_v19 = vpop.xlane.xlu1 %545 }
 0x22a   :  { %v543_v20 = vpop.xlane.xlu0 %542  ;;  %1235 = vrcp.f32 %v546_v19 }
 0x22b   :  { %1237 = vrcp.f32 %v543_v20 }
 0x22d   :  { %v570_v21 = vpop.xlane.xlu1 %569 }
 0x22e   :  { %v567_v22 = vpop.xlane.xlu0 %566  ;;  %1239 = vrcp.f32 %v570_v21 }
 0x22f   :  { %1241 = vrcp.f32 %v567_v22 }
 0x232   :  { %v552_v23 = vpop.xlane.xlu1 %551 }
 0x233   :  { %1243 = vrcp.f32 %v552_v23 }
 0x234   :  { %v1236_v29 = vpop.eup %1235 }
 0x235   :  { %v1238_v27 = vpop.eup %1237 }
 0x236   :  { %v576_v24 = vpop.xlane.xlu1 %575 }
 0x237   :  { %v549_v16 = vpop.xlane.xlu0 %548  ;;  %1245 = vrcp.f32 %v576_v24 }
 0x238   :  { %v1240_v35 = vpop.eup %1239 }
 0x239   :  { %v1242_v37 = vpop.eup %1241 }
 0x23a   :  { %v558_v28 = vpop.xlane.xlu1 %557 }
 0x23b   :  { %v573_v18 = vpop.xlane.xlu0 %572 }
 0x23c   :  { %1247 = vrcp.f32 %v573_v18 }
 0x23d   :  { %1249 = vrcp.f32 %v549_v16  ;;  %v1244_v43 = vpop.eup %1243 }
 0x23e   :  { %v582_v34 = vpop.xlane.xlu1 %581  ;;  %1251 = vrcp.f32 %v558_v28 }
 0x23f   :  { %v555_v25 = vpop.xlane.xlu0 %554  ;;  %1253 = vrcp.f32 %v582_v34 }
 0x241   :  { %v1246_v44 = vpop.eup %1245 }
 0x243   :  { %v579_v32 = vpop.xlane.xlu0 %578 }
 0x244   :  { %1255 = vrcp.f32 %v579_v32 }
 0x245   :  { %1257 = vrcp.f32 %v555_v25 }
 0x246   :  { %v564_v41 = vpop.xlane.xlu1 %563  ;;  %v1248_v46 = vpop.eup %1247 }
 0x247   :  { %v561_v42 = vpop.xlane.xlu0 %560  ;;  %v1250_v50 = vpop.eup %1249  ;;  %1259 = vrcp.f32 %v564_v41 }
 0x248   :  { %v1252_v59 = vpop.eup %1251 }
 0x249   :  { %v1254_v54 = vpop.eup %1253 }
 0x24a   :  { %v588_v51 = vpop.xlane.xlu1 %587 }
 0x24b   :  { %v585_v57 = vpop.xlane.xlu0 %584  ;;  %1261 = vrcp.f32 %v588_v51 }
 0x24c   :  { %1263 = vrcp.f32 %v585_v57 }
 0x24d   :  { %1265 = vrcp.f32 %v561_v42 }
 0x24e   :  { %v1256_v55 = vpop.eup %1255 }
 0x24f   :  { %v1258_v2 = vpop.eup %1257 }
 0x251   :  { %v1260_v6 = vpop.eup %1259 }
 0x255   :  { %v1262_v62 = vpop.eup %1261 }
 0x256   :  { %v1264_v8 = vpop.eup %1263 }
 0x257   :  { %v1266_v13 = vpop.eup %1265 }
 0x270   :  { %v1085_v26 = vpop.f32.mrb[8].mxu0 }
 0x271   :  { %v864_v30 = vmul.f32 %v1236_v29, %v1085_v26  ;;  %v679_v31 = vpop.f32.mrb[9].mxu0 }
 0x272   :  { %v863_v33 = vmul.f32 %v1238_v27, %v679_v31 }
 0x273   :  { %880 = vst.msk [vmem:[%s1666_s3 + $0x8] sm:$0xff] %vm137_vm0, %v864_v30 }
 0x274   :  { %879 = vst.msk [vmem:[%s1666_s3] sm:$0xff] %vm137_vm0, %v863_v33  ;;  %v1113_v36 = vpop.f32.mrb[8].mxu1 }
 0x275   :  { %v872_v38 = vmul.f32 %v1240_v35, %v1113_v36  ;;  %v808_v39 = vpop.f32.mrb[9].mxu1 }
 0x276   :  { %v871_v40 = vmul.f32 %v1242_v37, %v808_v39 }
 0x277   :  { %888 = vst.msk [vmem:[%s1666_s3 + $0x48] sm:$0xff] %vm137_vm0, %v872_v38 }
 0x278   :  { %887 = vst.msk [vmem:[%s1666_s3 + $0x40] sm:$0xff] %vm137_vm0, %v871_v40 }
 0x27b   :  { %v1116_v45 = vpop.f32.mrb[10].mxu1 }
 0x27c   :  { %v874_v47 = vmul.f32 %v1246_v44, %v1116_v45  ;;  %v1088_v48 = vpop.f32.mrb[10].mxu0  ;;  %v818_v49 = vpop.f32.mrb[11].mxu1 }
 0x27d   :  { %v866_v52 = vmul.f32 %v1244_v43, %v1088_v48  ;;  %v873_v53 = vmul.f32 %v1248_v46, %v818_v49  ;;  %v689_v56 = vpop.f32.mrb[11].mxu0 }
 0x27e   :  { %890 = vst.msk [vmem:[%s1666_s3 + $0x58] sm:$0xff] %vm137_vm0, %v874_v47  ;;  %v865_v58 = vmul.f32 %v1250_v50, %v689_v56 }
 0x27f   :  { %882 = vst.msk [vmem:[%s1666_s3 + $0x18] sm:$0xff] %vm137_vm0, %v866_v52  ;;  %889 = vst.msk [vmem:[%s1666_s3 + $0x50] sm:$0xff] %vm137_vm0, %v873_v53 }
 0x280   :  { %881 = vst.msk [vmem:[%s1666_s3 + $0x10] sm:$0xff] %vm137_vm0, %v865_v58 }
 0x283   :  { %v1119_v60 = vpop.f32.mrb[12].mxu1 }
 0x284   :  { %v876_v63 = vmul.f32 %v1254_v54, %v1119_v60  ;;  %v1091_v0 = vpop.f32.mrb[12].mxu0  ;;  %v828_v1 = vpop.f32.mrb[13].mxu1 }
 0x285   :  { %v868_v61 = vmul.f32 %v1252_v59, %v1091_v0  ;;  %v875_v3 = vmul.f32 %v1256_v55, %v828_v1  ;;  %v699_v4 = vpop.f32.mrb[13].mxu0 }
 0x286   :  { %892 = vst.msk [vmem:[%s1666_s3 + $0x68] sm:$0xff] %vm137_vm0, %v876_v63  ;;  %v867_v5 = vmul.f32 %v1258_v2, %v699_v4 }
 0x287   :  { %884 = vst.msk [vmem:[%s1666_s3 + $0x28] sm:$0xff] %vm137_vm0, %v868_v61  ;;  %891 = vst.msk [vmem:[%s1666_s3 + $0x60] sm:$0xff] %vm137_vm0, %v875_v3 }
 0x288   :  { %883 = vst.msk [vmem:[%s1666_s3 + $0x20] sm:$0xff] %vm137_vm0, %v867_v5 }
 0x28a   :  { %v1122_v7 = vpop.f32.mrb[14].mxu1 }
 0x28b   :  { %v878_v9 = vmul.f32 %v1262_v62, %v1122_v7  ;;  %v1094_v10 = vpop.f32.mrb[14].mxu0  ;;  %v838_v11 = vpop.f32.mrb[15].mxu1 }
 0x28c   :  { %v870_v14 = vmul.f32 %v1260_v6, %v1094_v10  ;;  %v877_v17 = vmul.f32 %v1264_v8, %v838_v11  ;;  %v709_v12 = vpop.f32.mrb[15].mxu0 }
 0x28d   :  { %894 = vst.msk [vmem:[%s1666_s3 + $0x78] sm:$0xff] %vm137_vm0, %v878_v9  ;;  %v869_v15 = vmul.f32 %v1266_v13, %v709_v12 }
 0x28e   :  { %886 = vst.msk [vmem:[%s1666_s3 + $0x38] sm:$0xff] %vm137_vm0, %v870_v14  ;;  %893 = vst.msk [vmem:[%s1666_s3 + $0x70] sm:$0xff] %vm137_vm0, %v877_v17 }
 0x28f   :  { %885 = vst.msk [vmem:[%s1666_s3 + $0x30] sm:$0xff] %vm137_vm0, %v869_v15 }

</bundles_post_ra>
